<compile_context>
chip_gen: v5e
topology: v5e:2x2
jax: 0.10.0
libtpu: 0.0.40
codegen_flags: <defaults>
</compile_context>

<pallas_src>
import math
from typing import NamedTuple

import jax
import jax.numpy as jnp
from jax.experimental import pallas as pl
from jax.experimental.pallas import tpu as pltpu

LANE = 128      # last-dim tiling quantum
SUBLANE = 8     # second-to-last-dim tiling quantum (f32)


def _round_up(n: int, m: int) -> int:
    return ((n + m - 1) // m) * m


def _cdiv(a: int, b: int) -> int:
    return -(-a // b)


class QNetParams(NamedTuple):
    w1: jax.Array   # [in_pad,  hid_pad]  bf16, [in, out] layout, zero-padded
    b1: jax.Array   # [1,       hid_pad]  f32
    w2: jax.Array   # [hid_pad, out_pad]  bf16
    b2: jax.Array   # [1,       out_pad]  f32
    input_size: int
    hidden_size: int
    output_size: int


def qnet_kernel(x_ref, w1_ref, b1_ref, w2_ref, b2_ref, o_ref):
    # MXU operands in bf16 (single-pass matmul on v5e/v6e/v7x), f32 accumulate.
    x = x_ref[...].astype(w1_ref.dtype)
    h = jnp.dot(x, w1_ref[...], preferred_element_type=jnp.float32)
    # Bias-add / ReLU stay in f32 (VPU-native on all generations, incl. v5e).
    h = jnp.maximum(h + b1_ref[...], 0.0)
    out = jnp.dot(h.astype(w2_ref.dtype), w2_ref[...],
                  preferred_element_type=jnp.float32)
    o_ref[...] = (out + b2_ref[...]).astype(o_ref.dtype)


def _cost_estimate(batch, in_p, hid_p, out_p):
    # Uses padded dims; harmless as a scheduler hint.
    flops = 2 * batch * (in_p * hid_p + hid_p * out_p)
    bytes_accessed = (4 * batch * in_p                      # x (f32)
                      + 2 * (in_p * hid_p + hid_p * out_p)  # bf16 weights
                      + 4 * (hid_p + out_p)                 # f32 biases
                      + 4 * batch * out_p)                  # out (f32)
    return pl.CostEstimate(flops=flops, transcendentals=0,
                           bytes_accessed=bytes_accessed)


def linear_qnet_infer_padded(x_pad, params: QNetParams):
    """Hot per-frame inference path.

    `x_pad` must already be (B_pad, in_pad) with B_pad a multiple of 8
    (keep a padded state buffer in the caller / rollout loop). Returns the
    padded (B_pad, out_pad) f32 logits -- no pad/slice HLOs in this path;
    slice / argmax only where the logits are consumed.
    """
    B_pad, in_p = x_pad.shape
    assert B_pad % SUBLANE == 0 and in_p == params.w1.shape[0]
    hid_p = params.w1.shape[1]
    out_p = params.w2.shape[1]

    vmem = pl.BlockSpec(memory_space=pltpu.MemorySpace.VMEM)
    return pl.pallas_call(
        qnet_kernel,
        out_shape=jax.ShapeDtypeStruct((B_pad, out_p), jnp.float32),
        in_specs=[vmem] * 5,
        out_specs=vmem,
        cost_estimate=_cost_estimate(B_pad, in_p, hid_p, out_p),
    )(x_pad, params.w1, params.b1, params.w2, params.b2)


def linear_qnet_forward(x, params: QNetParams, *, batch_tile: int = 512):
    """x: [B, input_size] -> [B, output_size]; same math as the PyTorch forward."""
    B, in_features = x.shape
    assert in_features == params.input_size
    in_p, hid_p = params.w1.shape
    out_p = params.w2.shape[1]

    B_pad = _round_up(B, SUBLANE)

    if B_pad <= 128:
        # Small / per-frame batch: gridless single-block path (no pipeline
        # prologue/epilogue, everything in VMEM as one block).
        x_pad = jnp.pad(x, ((0, B_pad - B), (0, in_p - in_features)))
        out_pad = linear_qnet_infer_padded(x_pad, params)
        return out_pad[:B, :params.output_size]

    # Replay/training batch: batch-tiled grid with >= 2 steps so the batch
    # splits across both TensorCores on v7x.  Tile is derived from B (never
    # round B up to a full batch_tile): padding waste is at most ~num_steps*8
    # rows.  VMEM at tile=512 is ~0.5 MiB f32 x/out double-buffered + ~130 KiB
    # bf16 weights -- nowhere near the 32 MiB scoped limit.
    num_steps = max(2, _cdiv(B_pad, batch_tile))
    tile = _round_up(_cdiv(B_pad, num_steps), SUBLANE)
    B_grid = tile * num_steps
    x_pad = jnp.pad(x, ((0, B_grid - B), (0, in_p - in_features)))

    out_pad = pl.pallas_call(
        qnet_kernel,
        out_shape=jax.ShapeDtypeStruct((B_grid, out_p), jnp.float32),
        grid_spec=pl.GridSpec(
            grid=(num_steps,),
            in_specs=[
                pl.BlockSpec((tile, in_p), lambda i: (i, 0)),
                # Constant index_maps -> weights stay resident across tiles.
                pl.BlockSpec((in_p, hid_p), lambda i: (0, 0)),
                pl.BlockSpec((1, hid_p), lambda i: (0, 0)),
                pl.BlockSpec((hid_p, out_p), lambda i: (0, 0)),
                pl.BlockSpec((1, out_p), lambda i: (0, 0)),
            ],
            out_specs=pl.BlockSpec((tile, out_p), lambda i: (i, 0)),
        ),
        compiler_params=pltpu.CompilerParams(
            dimension_semantics=("parallel",)),
        cost_estimate=_cost_estimate(B_grid, in_p, hid_p, out_p),
    )(x_pad, params.w1, params.b1, params.w2, params.b2)

    return out_pad[:B, :params.output_size]


def _init_linear(key, fan_in, fan_out, pad_in, pad_out):
    """torch.nn.Linear init U(-1/sqrt(fan_in), 1/sqrt(fan_in)); stored as
    [in, out] (transposed vs PyTorch), zero-padded to TPU-friendly shapes.
    Weights are stored bf16 (MXU operands); biases stay f32 (VPU epilogue)."""
    kw, kb = jax.random.split(key)
    bound = 1.0 / math.sqrt(fan_in)
    w = jax.random.uniform(kw, (fan_in, fan_out), jnp.float32, -bound, bound)
    b = jax.random.uniform(kb, (1, fan_out), jnp.float32, -bound, bound)
    w = jnp.pad(w, ((0, pad_in - fan_in), (0, pad_out - fan_out)))
    b = jnp.pad(b, ((0, 0), (0, pad_out - fan_out)))
    return w.astype(jnp.bfloat16), b


def init_qnet_params(key, input_size, hidden_size, output_size) -> QNetParams:
    in_p = _round_up(input_size, LANE)
    hid_p = _round_up(hidden_size, LANE)
    out_p = _round_up(output_size, LANE)
    k1, k2 = jax.random.split(key)
    w1, b1 = _init_linear(k1, input_size, hidden_size, in_p, hid_p)
    w2, b2 = _init_linear(k2, hidden_size, output_size, hid_p, out_p)
    return QNetParams(w1, b1, w2, b2, input_size, hidden_size, output_size)


# TODO(synk): Linear_QNet.save (torch.save checkpointing) has no kernel-level
# equivalent; parameter serialization is left to the host framework.


if __name__ == "__main__":
    # Classic snake-game Q-net shapes for this module.
    input_size, hidden_size, output_size = 11, 256, 3

    key = jax.random.PRNGKey(0)
    kx, kp, kmid, kbig = jax.random.split(key, 4)
    params = init_qnet_params(kp, input_size, hidden_size, output_size)

    def reference_kernel_math(x, p):
        """Emulates the kernel's math (bf16 MXU operands, f32 accumulation)."""
        w1 = p.w1[:p.input_size, :p.hidden_size]
        b1 = p.b1[:, :p.hidden_size]
        w2 = p.w2[:p.hidden_size, :p.output_size]
        b2 = p.b2[:, :p.output_size]
        h = jnp.dot(x.astype(jnp.bfloat16), w1,
                    preferred_element_type=jnp.float32)
        h = jnp.maximum(h + b1, 0.0)
        o = jnp.dot(h.astype(jnp.bfloat16), w2,
                    preferred_element_type=jnp.float32)
        return o + b2

    def reference_f32(x, p):
        """Full-f32 reference (PyTorch-module semantics with bf16-rounded W)."""
        w1 = p.w1[:p.input_size, :p.hidden_size].astype(jnp.float32)
        b1 = p.b1[:, :p.hidden_size]
        w2 = p.w2[:p.hidden_size, :p.output_size].astype(jnp.float32)
        b2 = p.b2[:, :p.output_size]
        return jnp.maximum(x @ w1 + b1, 0.0) @ w2 + b2

    # ---- Inference path: pre-padded x, gridless single-block kernel. -------
    batch = 8
    x = jax.random.normal(kx, (batch, input_size), jnp.float32)
    in_p = params.w1.shape[0]
    x_pad = jnp.pad(x, ((0, 0), (0, in_p - input_size)))   # done once by caller
    out_pad = jax.block_until_ready(linear_qnet_infer_padded(x_pad, params))
    out = out_pad[:batch, :output_size]
    assert out.shape == (batch, output_size)
    assert jnp.allclose(out, reference_kernel_math(x, params),
                        atol=1e-3, rtol=1e-3)
    assert jnp.allclose(out, reference_f32(x, params), atol=3e-2, rtol=3e-2)

    # ---- Awkward replay batch (300): adaptive tile, 2-step parallel grid. ---
    xm = jax.random.normal(kmid, (300, input_size), jnp.float32)
    outm = jax.block_until_ready(linear_qnet_forward(xm, params))
    assert outm.shape == (300, output_size)
    assert jnp.allclose(outm, reference_kernel_math(xm, params),
                        atol=1e-3, rtol=1e-3)
    assert jnp.allclose(outm, reference_f32(xm, params), atol=3e-2, rtol=3e-2)

    # ---- Large replay batch (1024): batch-tiled "parallel" grid path. -------
    xb = jax.random.normal(kbig, (1024, input_size), jnp.float32)
    outb = jax.block_until_ready(linear_qnet_forward(xb, params, batch_tile=512))
    assert outb.shape == (1024, output_size)
    assert jnp.allclose(outb, reference_kernel_math(xb, params),
                        atol=1e-3, rtol=1e-3)
    assert jnp.allclose(outb, reference_f32(xb, params), atol=3e-2, rtol=3e-2)

    print("KERNEL_OK")
</pallas_src>

<mosaic_0001>
module attributes {stable_mosaic.version = 11 : i64} {
  func.func @qnet_kernel(%arg0: memref<8x128xf32, #tpu.memory_space<vmem>>, %arg1: memref<128x256xbf16, #tpu.memory_space<vmem>>, %arg2: memref<1x256xf32, #tpu.memory_space<vmem>>, %arg3: memref<256x128xbf16, #tpu.memory_space<vmem>>, %arg4: memref<1x128xf32, #tpu.memory_space<vmem>>, %arg5: memref<8x128xf32, #tpu.memory_space<vmem>>) attributes {dimension_semantics = [], scalar_prefetch = 0 : i64, scratch_operands = 0 : i64, tpu.core_type = #tpu.core_type<tc>} {
    %c0 = arith.constant 0 : index
    %c0_0 = arith.constant 0 : index
    %0 = vector.load %arg0[%c0, %c0_0] : memref<8x128xf32, #tpu.memory_space<vmem>>, vector<8x128xf32>
    %1 = arith.truncf %0 : vector<8x128xf32> to vector<8x128xbf16>
    %c0_1 = arith.constant 0 : index
    %c0_2 = arith.constant 0 : index
    %2 = vector.load %arg1[%c0_1, %c0_2] : memref<128x256xbf16, #tpu.memory_space<vmem>>, vector<128x256xbf16>
    %cst = arith.constant dense<0.000000e+00> : vector<8x256xf32>
    %3 = tpu.matmul %1, %2, %cst {dimension_numbers = #tpu.dot_dimension_numbers<[1], [0], [0], [1], [0, 0, 1, 1], [], []>} : vector<8x128xbf16>, vector<128x256xbf16>, vector<8x256xf32> -> vector<8x256xf32>
    %c0_3 = arith.constant 0 : index
    %c0_4 = arith.constant 0 : index
    %4 = vector.load %arg2[%c0_3, %c0_4] : memref<1x256xf32, #tpu.memory_space<vmem>>, vector<1x256xf32>
    %5 = vector.broadcast %4 : vector<1x256xf32> to vector<8x256xf32>
    %6 = arith.addf %3, %5 : vector<8x256xf32>
    %cst_5 = arith.constant 0.000000e+00 : f32
    %7 = vector.broadcast %cst_5 : f32 to vector<8x256xf32>
    %8 = arith.maximumf %6, %7 : vector<8x256xf32>
    %9 = arith.truncf %8 : vector<8x256xf32> to vector<8x256xbf16>
    %c0_6 = arith.constant 0 : index
    %c0_7 = arith.constant 0 : index
    %10 = vector.load %arg3[%c0_6, %c0_7] : memref<256x128xbf16, #tpu.memory_space<vmem>>, vector<256x128xbf16>
    %cst_8 = arith.constant dense<0.000000e+00> : vector<8x128xf32>
    %11 = tpu.matmul %9, %10, %cst_8 {dimension_numbers = #tpu.dot_dimension_numbers<[1], [0], [0], [1], [0, 0, 1, 1], [], []>} : vector<8x256xbf16>, vector<256x128xbf16>, vector<8x128xf32> -> vector<8x128xf32>
    %c0_9 = arith.constant 0 : index
    %c0_10 = arith.constant 0 : index
    %12 = vector.load %arg4[%c0_9, %c0_10] : memref<1x128xf32, #tpu.memory_space<vmem>>, vector<1x128xf32>
    %13 = vector.broadcast %12 : vector<1x128xf32> to vector<8x128xf32>
    %14 = arith.addf %11, %13 : vector<8x128xf32>
    %c0_11 = arith.constant 0 : index
    %c0_12 = arith.constant 0 : index
    %15 = vector.load %arg5[%c0_11, %c0_12] : memref<8x128xf32, #tpu.memory_space<vmem>>, vector<8x128xf32>
    tpu.vector_store %arg5[%c0_11, %c0_12], %14 {strides = array<i32>} : memref<8x128xf32, #tpu.memory_space<vmem>>, vector<8x128xf32>,
    return
  }
}

</mosaic_0001>

<bundles_post_ra>
// kernel: tpu_custom_call.1
= control target key start
LH: loop header
LB: loop body
LE: loop exit
PB: predicated region body
PF: predicated region fallthrough
CT: control target
= control target key end

     0   :  { %10 = vsyncpa [#allocation3], 0  ;;  %s747_s0 = inlined_call_operand.hbm [shape: f32[8,128], index: 0, kind: input, shape index: {}]   ;;  %s748_s1 = inlined_call_operand.hbm [shape: bf16[128,256], index: 1, kind: input, shape index: {}]   ;;  %s749_s2 = inlined_call_operand.hbm [shape: f32[1,256], index: 2, kind: input, shape index: {}]   ;;  %s750_s3 = inlined_call_operand.hbm [shape: bf16[256,128], index: 3, kind: input, shape index: {}]   ;;  %s751_s4 = inlined_call_operand.vmem [shape: f32[1,128], index: 4, kind: input, shape index: {}]   ;;  %s752_s5 = inlined_call_operand.hbm [shape: f32[8,128], index: 5, kind: output, shape index: {}]  }
   0x1   :  { %11 = vsyncpa [#allocation6], 0 }
   0x2   :  { %12 = vsyncpa [#allocation9], 0  ;;  %s29_s20 = sshll.u32 %s748_s1, 4  ;;  %s30_s20 = int_to_ptr.hbm [resolvable:$true] %s29_s20 }
   0x3   :  { %13 = vsyncpa [#allocation4], 0  ;;  %s690_s21 = smov [#allocation5]   ;;  %s19_s25 = sshll.u32 %s747_s0, 4  ;;  %s20_s25 = int_to_ptr.hbm [resolvable:$true] %s19_s25 }
   0x4   :  { %s31_s22 = sshll.u32 %s690_s21, 4  ;;  %s691_s26 = smov 128   ;;  %s32_s22 = int_to_ptr.vmem [resolvable:$true] %s31_s22 }
   0x5   :  { %s692_s27 = smov 8   ;;  %s693_s28 = smov [#allocation2]  }
   0x6   :  { %37 = dma.hbm_to_vmem [thread:$0]  %s30_s20, 2048, %s32_s22, [#allocation6], %s691_s26, %s691_s26, %s692_s27  }
   0x7   :  { %s21_s29 = sshll.u32 %s693_s28, 4  ;;  %s43_s7 = sshll.u32 %s749_s2, 4  ;;  %s22_s29 = int_to_ptr.vmem [resolvable:$true] %s21_s29  ;;  %s44_s7 = int_to_ptr.hbm [resolvable:$true] %s43_s7 }
   0x8   :  { %24 = dma.hbm_to_vmem [thread:$0]  %s20_s25, 128, %s22_s29, [#allocation3]  }
   0x9   :  { %s53_s9 = sshll.u32 %s750_s3, 4  ;;  %s694_s10 = smov [#allocation7]   ;;  %s54_s9 = int_to_ptr.hbm [resolvable:$true] %s53_s9 }
   0xa   :  { %s45_s11 = sshll.u32 %s694_s10, 4  ;;  %s695_s0 = smov [#allocation8]   ;;  %s46_s11 = int_to_ptr.vmem [resolvable:$true] %s45_s11 }
   0xb   :  { %48 = dma.hbm_to_vmem [thread:$0]  %s44_s7, 32, %s46_s11, [#allocation6]  }
   0xc   :  { %s55_s12 = sshll.u32 %s695_s0, 4  ;;  %s696_s13 = smov 64   ;;  %s56_s12 = int_to_ptr.vmem [resolvable:$true] %s55_s12 }
   0xd   :  { %s697_s14 = smov 4  }
   0xe   :  { %61 = dma.hbm_to_vmem [thread:$0]  %s54_s9, 2048, %s56_s12, [#allocation9], %s696_s13, %s696_s13, %s697_s14  }
   0xf   :  { %682 = dma.done.wait [#allocation3], 128  }
  0x10   :  { %683 = vsyncadd [#allocation3], 4294967168 }
  0x11   :  { %684 = dma.done.wait [#allocation6], 2080  }
  0x12   :  { %685 = vsyncadd [#allocation6], 4294965216 }
  0x13   :  { %686 = dma.done.wait [#allocation9], 2048  }
  0x14   :  { %687 = vsyncadd [#allocation9], 4294965248  ;;  %v450_v0 = vld [vmem:[#allocation5 + $0x70] sm:$0xf]  ;;  %v535_v1 = vld [vmem:[#allocation5 + $0x74] sm:$0xf0] }
  0x15   :  { %v534_v2 = vld [vmem:[#allocation5 + $0x74] sm:$0xf]  ;;  %v451_v3 = vor.u32 %v535_v1, %v450_v0  ;;  %v452_v4 = vld [vmem:[#allocation5 + $0x78] sm:$0xf0]  ;;  %v442_v5 = vld [vmem:[#allocation5 + $0x60] sm:$0xf] }
  0x16   :  { %v533_v6 = vld [vmem:[#allocation5 + $0x64] sm:$0xf0]  ;;  %v455_v7 = vor.u32 %v534_v2, %v452_v4  ;;  %v532_v8 = vld [vmem:[#allocation5 + $0x64] sm:$0xf]  ;;  %v444_v9 = vld [vmem:[#allocation5 + $0x68] sm:$0xf0] }
  0x17   :  { %184 = vmatpush.bf16.msra.mxu0 %v451_v3  ;;  %v443_v10 = vor.u32 %v533_v6, %v442_v5  ;;  %v447_v11 = vor.u32 %v532_v8, %v444_v9  ;;  %v434_v12 = vld [vmem:[#allocation5 + $0x50] sm:$0xf]  ;;  %v531_v13 = vld [vmem:[#allocation5 + $0x54] sm:$0xf0]  ;;  %v530_v14 = vld [vmem:[#allocation5 + $0x54] sm:$0xf] }
  0x18   :  { %197 = vmatpush.bf16.msra.mxu1 %v455_v7  ;;  %v436_v15 = vld [vmem:[#allocation5 + $0x58] sm:$0xf0]  ;;  %v435_v16 = vor.u32 %v531_v13, %v434_v12  ;;  %v426_v18 = vld [vmem:[#allocation5 + $0x40] sm:$0xf]  ;;  %v529_v19 = vld [vmem:[#allocation5 + $0x44] sm:$0xf0] }
  0x19   :  { %v439_v17 = vor.u32 %v530_v14, %v436_v15  ;;  %v528_v20 = vld [vmem:[#allocation5 + $0x44] sm:$0xf]  ;;  %v428_v21 = vld [vmem:[#allocation5 + $0x48] sm:$0xf0]  ;;  %v427_v22 = vor.u32 %v529_v19, %v426_v18  ;;  %v543_v23 = vld [vmem:[#allocation8 + $0x38] sm:$0xff]  ;;  %s698_s15 = smov [#allocation10]  }
  0x1a   :  { %v551_v24 = vld [vmem:[#allocation8 + $0x78] sm:$0xff]  ;;  %v431_v25 = vor.u32 %v528_v20, %v428_v21  ;;  %v418_v26 = vld [vmem:[#allocation5 + $0x30] sm:$0xf]  ;;  %v526_v28 = vld [vmem:[#allocation5 + $0x34] sm:$0xf]  ;;  %346 = vmatpush.bf16.msra.mxu2 %v543_v23  ;;  %s378_s16 = sshll.u32 %s698_s15, 4  ;;  %s379_s16 = int_to_ptr.vmem [resolvable:$true] %s378_s16 }
  0x1b   :  { %185 = vmatpush.bf16.msra.mxu0 %v443_v10  ;;  %v527_v27 = vld [vmem:[#allocation5 + $0x34] sm:$0xf0]  ;;  %v420_v29 = vld [vmem:[#allocation5 + $0x38] sm:$0xf0]  ;;  %359 = vmatpush.bf16.msra.mxu3 %v551_v24  ;;  %v410_v34 = vld [vmem:[#allocation5 + $0x20] sm:$0xf] }
  0x1c   :  { %198 = vmatpush.bf16.msra.mxu1 %v447_v11  ;;  %v542_v30 = vld [vmem:[#allocation8 + $0x30] sm:$0xff]  ;;  %v419_v32 = vor.u32 %v527_v27, %v418_v26  ;;  %v423_v33 = vor.u32 %v526_v28, %v420_v29  ;;  %v525_v35 = vld [vmem:[#allocation5 + $0x24] sm:$0xf0]  ;;  %v524_v36 = vld [vmem:[#allocation5 + $0x24] sm:$0xf]  ;;  %s380_s19 = sshll.u32 %s752_s5, 4  ;;  %s381_s19 = int_to_ptr.hbm [resolvable:$true] %s380_s19 }
  0x1d   :  { %v550_v31 = vld [vmem:[#allocation8 + $0x70] sm:$0xff]  ;;  %v412_v37 = vld [vmem:[#allocation5 + $0x28] sm:$0xf0]  ;;  %v411_v40 = vor.u32 %v525_v35, %v410_v34  ;;  %v404_v45 = vld [vmem:[#allocation5 + $0x18] sm:$0xf0] }
  0x1e   :  { %347 = vmatpush.bf16.msra.mxu2 %v542_v30  ;;  %v541_v38 = vld [vmem:[#allocation8 + $0x28] sm:$0xff]  ;;  %v415_v41 = vor.u32 %v524_v36, %v412_v37  ;;  %v523_v43 = vld [vmem:[#allocation5 + $0x14] sm:$0xf0]  ;;  %v522_v44 = vld [vmem:[#allocation5 + $0x14] sm:$0xf] }
  0x1f   :  { %186 = vmatpush.bf16.msra.mxu0 %v435_v16  ;;  %360 = vmatpush.bf16.msra.mxu3 %v550_v31  ;;  %v549_v39 = vld [vmem:[#allocation8 + $0x68] sm:$0xff]  ;;  %v540_v46 = vld [vmem:[#allocation8 + $0x20] sm:$0xff]  ;;  %v407_v49 = vor.u32 %v522_v44, %v404_v45  ;;  %v539_v54 = vld [vmem:[#allocation8 + $0x18] sm:$0xff] }
  0x20   :  { %199 = vmatpush.bf16.msra.mxu1 %v439_v17  ;;  %v402_v42 = vld [vmem:[#allocation5 + $0x10] sm:$0xf]  ;;  %v548_v47 = vld [vmem:[#allocation8 + $0x60] sm:$0xff]  ;;  %v396_v53 = vld [vmem:[#allocation5 + $0x8] sm:$0xf0] }
  0x21   :  { %v403_v48 = vor.u32 %v523_v43, %v402_v42  ;;  %v394_v50 = vld [vmem:[#allocation5] sm:$0xf]  ;;  %v521_v51 = vld [vmem:[#allocation5 + $0x4] sm:$0xf0]  ;;  %v520_v52 = vld [vmem:[#allocation5 + $0x4] sm:$0xf] }
  0x22   :  { %348 = vmatpush.bf16.msra.mxu2 %v541_v38  ;;  %v547_v55 = vld [vmem:[#allocation8 + $0x58] sm:$0xff]  ;;  %v395_v56 = vor.u32 %v521_v51, %v394_v50  ;;  %v399_v58 = vor.u32 %v520_v52, %v396_v53  ;;  %v538_v59 = vld [vmem:[#allocation8 + $0x10] sm:$0xff]  ;;  %v537_v62 = vld [vmem:[#allocation8 + $0x8] sm:$0xff] }
  0x23   :  { %187 = vmatpush.bf16.msra.mxu0 %v427_v22  ;;  %361 = vmatpush.bf16.msra.mxu3 %v549_v39  ;;  %v80_v57 = vld [vmem:[#allocation2] sm:$0xff]  ;;  %v545_v63 = vld [vmem:[#allocation8 + $0x48] sm:$0xff]  ;;  %v536_v0 = vld [vmem:[#allocation8] sm:$0xff] }
  0x24   :  { %200 = vmatpush.bf16.msra.mxu1 %v431_v25  ;;  %v546_v60 = vld [vmem:[#allocation8 + $0x50] sm:$0xff]  ;;  %v81_v61 = vpack.c.bf16 %v80_v57, %v80_v57  ;;  %v544_v1 = vld [vmem:[#allocation8 + $0x40] sm:$0xff]  ;;  %v98_v2 = vld [vmem:[#allocation7] sm:$0x3] }
  0x25   :  { %v100_v3 = vperm.slane %v98_v2, 0  ;;  %v101_v4 = vperm.slane %v98_v2, 1  ;;  %v561_v15 = vld [vmem:[%s751_s4] ss:$0 sm:$0xff] }
  0x26   :  { %349 = vmatpush.bf16.msra.mxu2 %v540_v46 }
  0x27   :  { %188 = vmatpush.bf16.msra.mxu0 %v419_v32  ;;  %362 = vmatpush.bf16.msra.mxu3 %v548_v47 }
  0x28   :  { %201 = vmatpush.bf16.msra.mxu1 %v423_v33 }
  0x2a   :  { %350 = vmatpush.bf16.msra.mxu2 %v539_v54 }
  0x2b   :  { %189 = vmatpush.bf16.msra.mxu0 %v411_v40  ;;  %363 = vmatpush.bf16.msra.mxu3 %v547_v55 }
  0x2c   :  { %202 = vmatpush.bf16.msra.mxu1 %v415_v41 }
  0x2e   :  { %351 = vmatpush.bf16.msra.mxu2 %v538_v59 }
  0x2f   :  { %190 = vmatpush.bf16.msra.mxu0 %v403_v48  ;;  %364 = vmatpush.bf16.msra.mxu3 %v546_v60 }
  0x30   :  { %203 = vmatpush.bf16.msra.mxu1 %v407_v49 }
  0x32   :  { %352 = vmatpush.bf16.msra.mxu2 %v537_v62 }
  0x33   :  { %191 = vmatpush.bf16.msra.mxu0 %v395_v56  ;;  %365 = vmatpush.bf16.msra.mxu3 %v545_v63 }
  0x34   :  { %204 = vmatpush.bf16.msra.mxu1 %v399_v58 }
  0x36   :  { %192 = vmatmul.bf16.vlgmr.msra.gmra.mxu0 %v81_v61  ;;  %353 = vmatpush.bf16.msra.mxu2 %v536_v0 }
  0x37   :  { %205 = vmatmul.bf16.vlgmr.msra.gmra.mxu1 %v81_v61  ;;  %366 = vmatpush.bf16.msra.mxu3 %v544_v1 }
  0xb3   :  { %v193_v5 = vpop.f32.mrf.mxu0 }
  0xb4   :  { %v194_v6 = vadd.f32 %v193_v5, %v100_v3  ;;  %v206_v7 = vpop.f32.mrf.mxu1 }
  0xb5   :  { %v207_v8 = vadd.f32 %v206_v7, %v101_v4 }
  0xb6   :  { %v210_v9 = vmax.f32 %v194_v6, 0.0 }
  0xb7   :  { %v211_v10 = vmax.f32 %v207_v8, 0.0 }
  0xb8   :  { %v212_v11 = vpack.c.bf16 %v210_v9, %v210_v9 }
  0xb9   :  { %v213_v12 = vpack.c.bf16 %v211_v10, %v211_v10 }
  0xba   :  { %354 = vmatmul.bf16.vlgmr.msra.gmra.mxu2 %v212_v11 }
  0xbb   :  { %367 = vmatmul.bf16.vlgmr.msra.gmra.mxu3 %v213_v12  ;;  %v195_v13 = vpop.f32.mrf.mxu0 }
  0xbc   :  { %v208_v14 = vpop.f32.mrf.mxu1 }
 0x13d   :  { %v355_v16 = vpop.f32.mrf.mxu2 }
 0x13e   :  { %v356_v17 = vadd.f32 %v561_v15, %v355_v16  ;;  %v368_v18 = vpop.f32.mrf.mxu3 }
 0x140   :  { %v369_v19 = vadd.f32 %v368_v18, %v356_v17 }
 0x142   :  { %372 = vst [vmem:[#allocation10] sm:$0xff] %v369_v19 }
 0x143   :  { %383 = dma.vmem_to_hbm [thread:$0]  %s379_s16, 128, %s381_s19, [#allocation4]  }
 0x145   :  { %v357_v20 = vpop.f32.mrf.mxu2 }
 0x146   :  { %v370_v21 = vpop.f32.mrf.mxu3 }
 0x147   :  { %688 = dma.done.wait [#allocation4], 128  }
 0x148   :  { %689 = vsyncadd [#allocation4], 4294967168 }
 0x149   :  { %388 = vsyncpa [#allocation3], 1 }
 0x14a   :  { %389 = vsyncpa [#allocation6], 1 }
 0x14b   :  { %390 = vsyncpa [#allocation9], 1 }
 0x14c   :  { %391 = vsyncpa [#allocation4], 1 }

</bundles_post_ra>
